<compile_context>
chip_gen: v5e
topology: v5e:2x2
jax: 0.10.0
libtpu: 0.0.40
codegen_flags: <defaults>
</compile_context>

<pallas_src>
import math

import jax
import jax.numpy as jnp
from jax.experimental import pallas as pl
from jax.experimental.pallas import tpu as pltpu

# ---- static "config" ----
BATCH = 2
SEQ = 8
HIDDEN = 32
FC1 = 16
NUM_LABELS = 4

OUT_LANES = 128                              # lane-dense packed output width
INV_SEQ = 1.0 / SEQ                          # compile-time constant
INV_LOG_L = 1.0 / math.log(1.0 / NUM_LABELS)  # compile-time constant (negative)


def exit_layer_kernel(seq_ref, wp_ref, wc_ref, bias_ref, out_ref):
    seq = seq_ref[...]                                        # [B, S, H], f32 (no astype)

    # 'cls-mean' pooling as ONE weighted contraction over S:
    #   pool_in[b, h] = sum_s w[s] * seq[b, s, h],   w = [1 + 1/S, 1/S, ..., 1/S]
    s_idx = jax.lax.broadcasted_iota(jnp.int32, (BATCH, SEQ, HIDDEN), 1)
    w_s = jnp.where(s_idx == 0, 1.0 + INV_SEQ, INV_SEQ)
    pool_in = jnp.sum(seq * w_s, axis=1)                      # [B, H]

    # biases packed in one [2, 128] slab: row 0 = pooler bias, row 1 = classifier bias
    b_pool = bias_ref[0:1, 0:FC1]                             # [1, FC1]
    b_cls = bias_ref[1:2, 0:NUM_LABELS]                       # [1, L]

    # pooler: Linear(H -> FC1) + tanh   (dropout = identity in eval)
    pooled = jnp.tanh(
        jnp.dot(pool_in, wp_ref[...], preferred_element_type=jnp.float32) + b_pool
    )                                                         # [B, FC1]

    # classifier: Linear(FC1 -> L)
    logits = (
        jnp.dot(pooled, wc_ref[...], preferred_element_type=jnp.float32) + b_cls
    )                                                         # [B, L]

    # stable softmax; entropy straight from stabilized log-softmax
    m = jnp.max(logits, axis=1, keepdims=True)                # [B, 1]
    shifted = logits - m
    e = jnp.exp(shifted)
    sum_e = jnp.sum(e, axis=1, keepdims=True)                 # [B, 1]
    p = e * pl.reciprocal(sum_e, approx=True)                 # [B, L]  (EUP vrcp)
    log_p = shifted - jnp.log(sum_e)                          # log-softmax, no 0*log(0)
    ent = jnp.sum(p * log_p, axis=1, keepdims=True) * INV_LOG_L  # [B, 1]

    # Build the lane-dense packed slab [logits | probs | entropy | 0-pad] with
    # constant one-hot "placement" matmuls -> one unmasked dense store.
    row4 = jax.lax.broadcasted_iota(jnp.int32, (NUM_LABELS, OUT_LANES), 0)
    col4 = jax.lax.broadcasted_iota(jnp.int32, (NUM_LABELS, OUT_LANES), 1)
    sel_logits = (col4 == row4).astype(jnp.float32)                 # lanes 0:L
    sel_probs = (col4 == row4 + NUM_LABELS).astype(jnp.float32)     # lanes L:2L
    col1 = jax.lax.broadcasted_iota(jnp.int32, (1, OUT_LANES), 1)
    sel_ent = (col1 == 2 * NUM_LABELS).astype(jnp.float32)          # lane 2L

    packed = (
        jnp.dot(logits, sel_logits, preferred_element_type=jnp.float32)
        + jnp.dot(p, sel_probs, preferred_element_type=jnp.float32)
        + ent * sel_ent
    )                                                         # [B, 128]
    out_ref[...] = packed


def exit_layer_forward(sequence_output, w_pool, b_pool, w_cls, b_cls):
    B, S, H = sequence_output.shape
    L = w_cls.shape[1]
    assert (S, H, L) == (SEQ, HIDDEN, NUM_LABELS)

    # One-time parameter packing: both biases in a single lane-padded slab.
    bias_slab = (
        jnp.zeros((2, OUT_LANES), jnp.float32)
        .at[0, :FC1].set(b_pool.reshape(-1))
        .at[1, :L].set(b_cls.reshape(-1))
    )

    packed = pl.pallas_call(
        exit_layer_kernel,
        out_shape=jax.ShapeDtypeStruct((B, OUT_LANES), jnp.float32),
        in_specs=[
            pl.BlockSpec(memory_space=pltpu.VMEM),   # sequence_output [B,S,H]
            pl.BlockSpec(memory_space=pltpu.VMEM),   # w_pool [H,FC1]
            pl.BlockSpec(memory_space=pltpu.VMEM),   # w_cls  [FC1,L]
            pl.BlockSpec(memory_space=pltpu.VMEM),   # bias slab [2,128]
        ],
        out_specs=pl.BlockSpec(memory_space=pltpu.VMEM),
    )(sequence_output, w_pool, w_cls, bias_slab)

    # Unpack the lane-dense slab in the wrapper.
    logits = packed[:, :L]
    softm = packed[:, L:2 * L]
    entropy = packed[:, 2 * L]
    # Module returns outputs = (logits,); softm / entropy are stored as attrs.
    return logits, softm, entropy


def _reference(sequence_output, w_pool, b_pool, w_cls, b_cls):
    seq = sequence_output.astype(jnp.float32)
    pool_in = seq[:, 0, :] + jnp.mean(seq, axis=1)
    pooled = jnp.tanh(pool_in @ w_pool + b_pool)
    logits = pooled @ w_cls + b_cls
    p = jax.nn.softmax(logits, axis=1)
    ent = jnp.sum(p * jnp.log(p), axis=1) / jnp.log(1.0 / NUM_LABELS)
    return logits, p, ent


if __name__ == "__main__":
    key = jax.random.PRNGKey(0)
    k_seq, k_wp, k_bp, k_wc, k_bc = jax.random.split(key, 5)

    # Deterministic synthetic parameters (shapes from nn.Linear definitions).
    sequence_output = jax.random.normal(k_seq, (BATCH, SEQ, HIDDEN), jnp.float32)
    w_pool = jax.random.normal(k_wp, (HIDDEN, FC1), jnp.float32) * 0.1   # Linear(H, FC1).weight.T
    b_pool = jax.random.normal(k_bp, (1, FC1), jnp.float32) * 0.1
    w_cls = jax.random.normal(k_wc, (FC1, NUM_LABELS), jnp.float32) * 0.1  # Linear(FC1, L).weight.T
    b_cls = jax.random.normal(k_bc, (1, NUM_LABELS), jnp.float32) * 0.1

    logits, softm, entropy = exit_layer_forward(
        sequence_output, w_pool, b_pool, w_cls, b_cls)
    jax.block_until_ready((logits, softm, entropy))

    ref_logits, ref_softm, ref_ent = _reference(
        sequence_output, w_pool, b_pool, w_cls, b_cls)

    # logits use exact math; probs/entropy allow for the EUP approx reciprocal (~2^-12 rel).
    assert jnp.allclose(logits, ref_logits, atol=1e-5, rtol=1e-5)
    assert jnp.allclose(softm, ref_softm, atol=1e-3, rtol=1e-3)
    assert jnp.allclose(entropy, ref_ent, atol=1e-3, rtol=1e-3)

    print("KERNEL_OK")
</pallas_src>

<mosaic_0001>
module attributes {stable_mosaic.version = 11 : i64} {
  func.func @exit_layer_kernel(%arg0: memref<2x8x32xf32, #tpu.memory_space<vmem>>, %arg1: memref<32x16xf32, #tpu.memory_space<vmem>>, %arg2: memref<16x4xf32, #tpu.memory_space<vmem>>, %arg3: memref<2x128xf32, #tpu.memory_space<vmem>>, %arg4: memref<2x128xf32, #tpu.memory_space<vmem>>) attributes {dimension_semantics = [], scalar_prefetch = 0 : i64, scratch_operands = 0 : i64, tpu.core_type = #tpu.core_type<tc>} {
    %c0 = arith.constant 0 : index
    %c0_0 = arith.constant 0 : index
    %c0_1 = arith.constant 0 : index
    %0 = vector.load %arg0[%c0, %c0_0, %c0_1] : memref<2x8x32xf32, #tpu.memory_space<vmem>>, vector<2x8x32xf32>
    %1 = tpu.iota {dimensions = array<i32: 1>} : vector<2x8x32xi32>
    %c0_i32 = arith.constant 0 : i32
    %2 = vector.broadcast %c0_i32 : i32 to vector<2x8x32xi32>
    %3 = arith.cmpi eq, %1, %2 : vector<2x8x32xi32>
    %cst = arith.constant 1.125000e+00 : f32
    %cst_2 = arith.constant 1.250000e-01 : f32
    %4 = vector.broadcast %cst : f32 to vector<2x8x32xf32>
    %5 = vector.broadcast %cst_2 : f32 to vector<2x8x32xf32>
    %6 = arith.select %3, %4, %5 : vector<2x8x32xi1>, vector<2x8x32xf32>
    %7 = arith.mulf %0, %6 : vector<2x8x32xf32>
    %cst_3 = arith.constant dense<0.000000e+00> : vector<2x32xf32>
    %8 = vector.multi_reduction <add>, %7, %cst_3 [1] : vector<2x8x32xf32> to vector<2x32xf32>
    %c0_4 = arith.constant 0 : index
    %c0_5 = arith.constant 0 : index
    %9 = vector.load %arg3[%c0_4, %c0_5] : memref<2x128xf32, #tpu.memory_space<vmem>>, vector<1x16xf32>
    %c1 = arith.constant 1 : index
    %c0_6 = arith.constant 0 : index
    %10 = vector.load %arg3[%c1, %c0_6] : memref<2x128xf32, #tpu.memory_space<vmem>>, vector<1x4xf32>
    %c0_7 = arith.constant 0 : index
    %c0_8 = arith.constant 0 : index
    %11 = vector.load %arg1[%c0_7, %c0_8] : memref<32x16xf32, #tpu.memory_space<vmem>>, vector<32x16xf32>
    %cst_9 = arith.constant dense<0.000000e+00> : vector<2x16xf32>
    %12 = tpu.matmul %8, %11, %cst_9 {dimension_numbers = #tpu.dot_dimension_numbers<[1], [0], [0], [1], [0, 0, 1, 1], [], []>} : vector<2x32xf32>, vector<32x16xf32>, vector<2x16xf32> -> vector<2x16xf32>
    %13 = vector.broadcast %9 : vector<1x16xf32> to vector<2x16xf32>
    %14 = arith.addf %12, %13 : vector<2x16xf32>
    %15 = math.tanh %14 : vector<2x16xf32>
    %c0_10 = arith.constant 0 : index
    %c0_11 = arith.constant 0 : index
    %16 = vector.load %arg2[%c0_10, %c0_11] : memref<16x4xf32, #tpu.memory_space<vmem>>, vector<16x4xf32>
    %cst_12 = arith.constant dense<0.000000e+00> : vector<2x4xf32>
    %17 = tpu.matmul %15, %16, %cst_12 {dimension_numbers = #tpu.dot_dimension_numbers<[1], [0], [0], [1], [0, 0, 1, 1], [], []>} : vector<2x16xf32>, vector<16x4xf32>, vector<2x4xf32> -> vector<2x4xf32>
    %18 = vector.broadcast %10 : vector<1x4xf32> to vector<2x4xf32>
    %19 = arith.addf %17, %18 : vector<2x4xf32>
    %cst_13 = arith.constant dense<0xFF800000> : vector<2xf32>
    %20 = vector.multi_reduction <maximumf>, %19, %cst_13 [1] : vector<2x4xf32> to vector<2xf32>
    %21 = vector.shape_cast %20 : vector<2xf32> to vector<2x1xf32>
    %22 = vector.broadcast %21 : vector<2x1xf32> to vector<2x4xf32>
    %23 = arith.subf %19, %22 : vector<2x4xf32>
    %24 = math.exp %23 : vector<2x4xf32>
    %cst_14 = arith.constant dense<0.000000e+00> : vector<2xf32>
    %25 = vector.multi_reduction <add>, %24, %cst_14 [1] : vector<2x4xf32> to vector<2xf32>
    %26 = vector.shape_cast %25 : vector<2xf32> to vector<2x1xf32>
    %27 = tpu.reciprocal %26 {approx = true} : vector<2x1xf32> -> vector<2x1xf32>
    %28 = vector.broadcast %27 : vector<2x1xf32> to vector<2x4xf32>
    %29 = arith.mulf %24, %28 : vector<2x4xf32>
    %30 = math.log %26 : vector<2x1xf32>
    %31 = vector.broadcast %30 : vector<2x1xf32> to vector<2x4xf32>
    %32 = arith.subf %23, %31 : vector<2x4xf32>
    %33 = arith.mulf %29, %32 : vector<2x4xf32>
    %cst_15 = arith.constant dense<0.000000e+00> : vector<2xf32>
    %34 = vector.multi_reduction <add>, %33, %cst_15 [1] : vector<2x4xf32> to vector<2xf32>
    %35 = vector.shape_cast %34 : vector<2xf32> to vector<2x1xf32>
    %cst_16 = arith.constant -0.72134751 : f32
    %36 = vector.broadcast %cst_16 : f32 to vector<2x1xf32>
    %37 = arith.mulf %35, %36 : vector<2x1xf32>
    %38 = tpu.iota {dimensions = array<i32: 0>} : vector<4x128xi32>
    %39 = tpu.iota {dimensions = array<i32: 1>} : vector<4x128xi32>
    %40 = arith.cmpi eq, %39, %38 : vector<4x128xi32>
    %41 = arith.extui %40 : vector<4x128xi1> to vector<4x128xi32>
    %42 = arith.sitofp %41 : vector<4x128xi32> to vector<4x128xf32>
    %c4_i32 = arith.constant 4 : i32
    %43 = vector.broadcast %c4_i32 : i32 to vector<4x128xi32>
    %44 = arith.addi %38, %43 : vector<4x128xi32>
    %45 = arith.cmpi eq, %39, %44 : vector<4x128xi32>
    %46 = arith.extui %45 : vector<4x128xi1> to vector<4x128xi32>
    %47 = arith.sitofp %46 : vector<4x128xi32> to vector<4x128xf32>
    %48 = tpu.iota {dimensions = array<i32: 1>} : vector<1x128xi32>
    %c8_i32 = arith.constant 8 : i32
    %49 = vector.broadcast %c8_i32 : i32 to vector<1x128xi32>
    %50 = arith.cmpi eq, %48, %49 : vector<1x128xi32>
    %51 = arith.extui %50 : vector<1x128xi1> to vector<1x128xi32>
    %52 = arith.sitofp %51 : vector<1x128xi32> to vector<1x128xf32>
    %cst_17 = arith.constant dense<0.000000e+00> : vector<2x128xf32>
    %53 = tpu.matmul %19, %42, %cst_17 {dimension_numbers = #tpu.dot_dimension_numbers<[1], [0], [0], [1], [0, 0, 1, 1], [], []>} : vector<2x4xf32>, vector<4x128xf32>, vector<2x128xf32> -> vector<2x128xf32>
    %cst_18 = arith.constant dense<0.000000e+00> : vector<2x128xf32>
    %54 = tpu.matmul %29, %47, %cst_18 {dimension_numbers = #tpu.dot_dimension_numbers<[1], [0], [0], [1], [0, 0, 1, 1], [], []>} : vector<2x4xf32>, vector<4x128xf32>, vector<2x128xf32> -> vector<2x128xf32>
    %55 = arith.addf %53, %54 : vector<2x128xf32>
    %56 = vector.broadcast %37 : vector<2x1xf32> to vector<2x128xf32>
    %57 = vector.broadcast %52 : vector<1x128xf32> to vector<2x128xf32>
    %58 = arith.mulf %56, %57 : vector<2x128xf32>
    %59 = arith.addf %55, %58 : vector<2x128xf32>
    %c0_19 = arith.constant 0 : index
    %c0_20 = arith.constant 0 : index
    %60 = vector.load %arg4[%c0_19, %c0_20] : memref<2x128xf32, #tpu.memory_space<vmem>>, vector<2x128xf32>
    tpu.vector_store %arg4[%c0_19, %c0_20], %59 {strides = array<i32>} : memref<2x128xf32, #tpu.memory_space<vmem>>, vector<2x128xf32>,
    return
  }
}

</mosaic_0001>

<bundles_post_ra>
// kernel: tpu_custom_call.1
= control target key start
LH: loop header
LB: loop body
LE: loop exit
PB: predicated region body
PF: predicated region fallthrough
CT: control target
= control target key end

     0   :  { %v20_v2 = vlaneseq  ;;  %s326_s0 = inlined_call_operand.vmem [shape: f32[2,8,32], index: 0, kind: input, shape index: {}]   ;;  %s327_s1 = inlined_call_operand.vmem [shape: f32[32,16], index: 1, kind: input, shape index: {}]   ;;  %s328_s2 = inlined_call_operand.vmem [shape: f32[16,4], index: 2, kind: input, shape index: {}]   ;;  %s329_s3 = inlined_call_operand.vmem [shape: f32[2,128], index: 3, kind: input, shape index: {}]   ;;  %s330_s4 = inlined_call_operand.hbm [shape: f32[2,128], index: 4, kind: output, shape index: {}]  }
   0x1   :  { %v46_v0 = vld [vmem:[%s327_s1 + $0x18] sm:$0xff]  ;;  %v45_v1 = vld [vmem:[%s327_s1 + $0x10] sm:$0xff]  ;;  %v44_v3 = vld [vmem:[%s327_s1 + $0x8] sm:$0xff] }
   0x2   :  { %66 = vmatpush.msra.mxu0 %v46_v0  ;;  %v18_v4 = vld [vmem:[%s326_s0] sm:$0xff]  ;;  %v21_v5 = vshrl.u32 %v20_v2, 7  ;;  %v19_v6 = vld [vmem:[%s326_s0 + $0x8] sm:$0xff] }
   0x4   :  { %67 = vmatpush.msra.mxu0 %v45_v1 }
   0x5   :  { %9 = vsyncpa [#allocation3], 0  ;;  %v43_v7 = vld [vmem:[%s327_s1] sm:$0xff]  ;;  %vm22_vm0 = vcmp.eq.s32.totalorder %v21_v5, 0  ;;  %v255_v8 = vmov 0.125   ;;  %vm26_vm1 = vcmask 261120  }
   0x6   :  { %68 = vmatpush.msra.mxu0 %v44_v3  ;;  %v23_v9 = vsel %vm22_vm0, 1.125, %v255_v8  ;;  %vm50_vm2 = vcmask 1041409   ;;  %v76_v27 = vld [vmem:[%s328_s2 + $0x8] sm:$0xff]  ;;  %v75_v28 = vld [vmem:[%s328_s2] sm:$0xff]  ;;  %vm78_vm3 = vcmask 130048   ;;  %v123_v33 = vand.u32 127, %v20_v2 }
   0x7   :  { %v24_v10 = vmul.f32 %v23_v9, %v18_v4  ;;  %v25_v11 = vmul.f32 %v23_v9, %v19_v6  ;;  %96 = vmatpush.msra.mxu1 %v76_v27  ;;  %v219_v29 = vld [vmem:[%s329_s3] ss:$0 sm:$0xff]  ;;  %v256_v34 = vmov 0.0   ;;  %vm138_vm5 = vcmask 1043456   ;;  %v220_v36 = vld [vmem:[%s329_s3 + $0x1] ss:$0 sm:$0xff] }
   0x8   :  { %69 = vmatpush.msra.mxu0 %v43_v7  ;;  %vm124_vm4 = vcmp.eq.s32.totalorder %v123_v33, %v21_v5  ;;  %vm134_vm6 = vcmask 31744   ;;  %vm102_vm7 = vcmask 25600   ;;  %v127_v45 = vadd.s32 4, %v21_v5  ;;  %s257_s3 = smov [#allocation2]   ;;  %s198_s9 = sshll.u32 %s330_s4, 4  ;;  %s199_s9 = int_to_ptr.hbm [resolvable:$true] %s198_s9 }
   0x9   :  { %v27_v12 = vsel %vm26_vm1, %v24_v10, 0.0  ;;  %v34_v13 = vsel %vm26_vm1, %v25_v11, 0.0  ;;  %97 = vmatpush.msra.mxu1 %v75_v28  ;;  %v209_v35 = vsel %vm124_vm4, 1.0, %v256_v34  ;;  %vm131_vm9 = vcmp.eq.s32.totalorder %v123_v33, 8  ;;  %s196_s6 = sshll.u32 %s257_s3, 4  ;;  %s197_s6 = int_to_ptr.vmem [resolvable:$true] %s196_s6 }
   0xa   :  { %v28_v14 = vrot.slane %v27_v12, 4  ;;  %v35_v15 = vrot.slane %v34_v13, 4  ;;  %214 = vmatpush.msk.msra.mxu3 %vm138_vm5, %v209_v35  ;;  %vm128_vm8 = vcmp.eq.s32.totalorder %v123_v33, %v127_v45  ;;  %v211_v57 = vsel %vm131_vm9, 1.0, %v256_v34 }
   0xb   :  { %v210_v46 = vsel %vm128_vm8, 1.0, %v256_v34 }
   0xc   :  { %v29_v16 = vadd.f32 %v28_v14, %v27_v12  ;;  %v36_v17 = vadd.f32 %v35_v15, %v34_v13  ;;  %212 = vmatpush.msk.msra.mxu2 %vm138_vm5, %v210_v46 }
   0xe   :  { %v30_v18 = vrot.slane %v29_v16, 2  ;;  %v37_v19 = vrot.slane %v36_v17, 2 }
  0x10   :  { %v31_v20 = vadd.f32 %v30_v18, %v29_v16  ;;  %v38_v21 = vadd.f32 %v37_v19, %v36_v17 }
  0x12   :  { %v32_v22 = vrot.slane %v31_v20, 1  ;;  %v39_v23 = vrot.slane %v38_v21, 1 }
  0x14   :  { %v33_v24 = vadd.f32 %v32_v22, %v31_v20  ;;  %v40_v25 = vadd.f32 %v39_v23, %v38_v21 }
  0x16   :  { %v51_v26 = vsel %vm50_vm2, %v40_v25, %v33_v24 }
  0x17   :  { %207 = vmatmul.msk.f32.vlgmr.msra.gmra.mxu0 %vm26_vm1, %v51_v26 }
  0x94   :  { %v71_v30 = vpop.f32.mrf.mxu0 }
  0x95   :  { %v72_v31 = vadd.f32 %v219_v29, %v71_v30 }
  0x97   :  { %221 = vtanh.f32 %v72_v31 }
  0x9d   :  { %v222_v32 = vpop.eup %221 }
  0x9e   :  { %208 = vmatmul.msk.f32.vlgmr.msra.gmra.mxu1 %vm78_vm3, %v222_v32 }
 0x11b   :  { %v99_v37 = vpop.f32.mrf.mxu1 }
 0x11c   :  { %v100_v38 = vadd.f32 %v220_v36, %v99_v37 }
 0x11e   :  { %215 = vmatmul.msk.f32.vlgmr.msra.gmra.mxu3 %vm134_vm6, %v100_v38  ;;  %v103_v39 = vsel %vm102_vm7, %v100_v38, -inf }
 0x11f   :  { %104 = vmax.xlane.f32.xlu0 %v103_v39 }
 0x192   :  { %v105_v40 = vpop.xlane.xlu0 %104 }
 0x193   :  { %v106_v41 = vsub.f32 %v100_v38, %v105_v40 }
 0x195   :  { %v107_v42 = vmul.f32 1.442695, %v106_v41 }
 0x197   :  { %223 = vpow2.f32 %v107_v42 }
 0x19d   :  { %v224_v43 = vpop.eup %223 }
 0x19e   :  { %v109_v44 = vsel %vm102_vm7, %v224_v43, 0.0 }
 0x19f   :  { %110 = vadd.xlane.f32.xlu0 %v109_v44 }
 0x1a1   :  { %v185_v58 = vpop.f32.mrf.mxu3 }
 0x212   :  { %v111_v47 = vpop.xlane.xlu0 %110 }
 0x213   :  { %225 = vrcp.f32 %v111_v47 }
 0x214   :  { %227 = vlog2.f32 %v111_v47 }
 0x219   :  { %v226_v48 = vpop.eup %225 }
 0x21a   :  { %v228_v49 = vpop.eup %227  ;;  %v113_v50 = vmul.f32 %v226_v48, %v224_v43 }
 0x21b   :  { %v115_v51 = vmul.f32 0.6931472, %v228_v49 }
 0x21c   :  { %213 = vmatmul.msk.f32.vlgmr.msra.gmra.mxu2 %vm134_vm6, %v113_v50 }
 0x21d   :  { %v116_v52 = vsub.f32 %v106_v41, %v115_v51 }
 0x21f   :  { %v117_v53 = vmul.f32 %v116_v52, %v113_v50 }
 0x221   :  { %v118_v54 = vsel %vm102_vm7, %v117_v53, 0.0 }
 0x222   :  { %119 = vadd.xlane.f32.xlu1 %v118_v54 }
 0x295   :  { %v120_v55 = vpop.xlane.xlu1 %119 }
 0x296   :  { %v121_v56 = vmul.f32 -0.7213475, %v120_v55 }
 0x298   :  { %v188_v60 = vmul.f32 %v211_v57, %v121_v56 }
 0x29f   :  { %v159_v59 = vpop.f32.mrf.mxu2 }
 0x2a0   :  { %v186_v61 = vadd.f32 %v185_v58, %v159_v59 }
 0x2a2   :  { %v189_v62 = vadd.f32 %v188_v60, %v186_v61 }
 0x2a4   :  { %190 = vst [vmem:[#allocation2] sm:$0x3] %v189_v62 }
 0x2a5   :  { %201 = dma.vmem_to_hbm [thread:$0]  %s197_s6, 32, %s199_s9, [#allocation3]  }
 0x2a6   :  { %253 = dma.done.wait [#allocation3], 32  }
 0x2a7   :  { %254 = vsyncadd [#allocation3], 4294967264 }
 0x2a8   :  { %206 = vsyncpa [#allocation3], 1 }

</bundles_post_ra>
